<compile_context>
chip_gen: v7x
topology: tpu7x:2x2x1
jax: 0.10.0
libtpu: 0.0.40
codegen_flags: <defaults>
</compile_context>

<pallas_src>
import jax
import jax.numpy as jnp
from jax.experimental import pallas as pl
from jax.experimental.pallas import tpu as pltpu


# --------------------------------------------------------------------------
# Kernel: B_blk batch elements per grid step, both layers fused.
# --------------------------------------------------------------------------
def _fused_conv_block_kernel(x_ref, w1_ref, b1_ref, w2_ref, b2_ref, o_ref,
                             xpad_ref, ypad_ref):
    """Fused (conv3x3 + BN + ReLU) x 2 for a stack of B images.

    x_ref:    (B, H, W*Cin)        bf16 input images, channels folded into lanes
    w1_ref:   (3, W*Cin,  W*Cout)  banded layer-1 weight (BN scale folded), bf16
    b1_ref:   (1, W*Cout)          layer-1 folded bias (tiled over W), f32
    w2_ref:   (3, W*Cout, W*Cout)  banded layer-2 weight, bf16
    b2_ref:   (1, W*Cout)          layer-2 folded bias, f32
    o_ref:    (B, H, W*Cout)       output (lane-dense)
    xpad_ref: (B*(H+2), W*Cin)     bf16 VMEM scratch, per-image row halo
    ypad_ref: (B*(H+2), W*Cout)    bf16 VMEM scratch, per-image row halo
    """
    B, H, Wci = x_ref.shape
    Wco = ypad_ref.shape[1]
    P = H + 2            # padded rows per image
    R = B * P            # total stacked rows
    M = R - 2            # matmul M dim (rows at image seams are junk, dropped)

    zx = jnp.zeros((1, Wci), xpad_ref.dtype)
    zy = jnp.zeros((1, Wco), ypad_ref.dtype)

    # Zero ONLY the per-image halo rows; interiors are fully overwritten below.
    # Re-done every step (cheap: 2*B single-row stores) instead of guarding
    # with program_id==0, so it stays correct under megacore sharding of the
    # 'parallel' batch axis.
    for b in range(B):
        top, bot = b * P, b * P + H + 1
        xpad_ref[top:top + 1, :] = zx
        xpad_ref[bot:bot + 1, :] = zx
        ypad_ref[top:top + 1, :] = zy
        ypad_ref[bot:bot + 1, :] = zy
        # layer-1 input interior (already bf16 -> no per-dy casts later)
        xpad_ref[top + 1:top + 1 + H, :] = x_ref[b]

    # ---- layer 1: conv3x3 (+ folded BN) -> bias -> ReLU over the whole stack
    # TODO(synk): optionally fuse the 3 dy matmuls into one K=3*W*C matmul
    #             (saves 2 MRF drains + 2 f32 adds per layer on v5e/v6e).
    acc = jnp.zeros((M, Wco), jnp.float32)
    for dy in range(3):                           # 3 row-shifted MXU matmuls
        acc += jnp.dot(xpad_ref[dy:dy + M, :], w1_ref[dy],
                       preferred_element_type=jnp.float32)
    y1 = jnp.maximum(acc + b1_ref[...], 0.0)      # (M, W*Cout), f32

    # Layer-2 input: write each image's interior back into its haloed slot
    # (rows at image seams of y1 are junk and simply never copied).
    for b in range(B):
        ypad_ref[b * P + 1:b * P + 1 + H, :] = (
            y1[b * P:b * P + H, :].astype(ypad_ref.dtype))

    # ---- layer 2: conv3x3 (+ folded BN) -> bias -> ReLU over the whole stack
    acc2 = jnp.zeros((M, Wco), jnp.float32)
    for dy in range(3):
        acc2 += jnp.dot(ypad_ref[dy:dy + M, :], w2_ref[dy],
                        preferred_element_type=jnp.float32)
    y2 = jnp.maximum(acc2 + b2_ref[...], 0.0)

    for b in range(B):                            # lane-dense (128-wide) stores
        o_ref[b] = y2[b * P:b * P + H, :].astype(o_ref.dtype)


# --------------------------------------------------------------------------
# pallas_call wrapper.
# --------------------------------------------------------------------------
def _pick_batch_block(n, h, target_rows=128):
    """Largest divisor of n whose stacked rows fit ~target_rows (MXU depth).

    TODO(synk): on v7x prefer a choice that keeps >=2 grid steps so the
                'parallel' batch axis can be megacore-sharded when N is large.
    """
    best = 1
    for d in range(1, n + 1):
        if n % d == 0 and d * h <= target_rows:
            best = d
    return best


def conv_block_pallas(x_flat, w1b, b1t, w2b, b2t, *, H, W, ci, co, out_dtype,
                      b_blk):
    """x_flat: (N, H, W*ci) bf16; banded weights/biases as built below."""
    N = x_flat.shape[0]
    Wci, Wco = W * ci, W * co
    n_steps = N // b_blk

    # Explicit VMEM budget: weights single-buffered, activations double-buffered.
    out_bytes = jnp.dtype(out_dtype).itemsize
    need = (2 * b_blk * H * Wci * 2                # x blocks (bf16, 2 bufs)
            + 2 * b_blk * H * Wco * out_bytes      # out blocks (2 bufs)
            + 3 * Wci * Wco * 2                    # w1 (single-buffered)
            + 3 * Wco * Wco * 2                    # w2 (single-buffered)
            + 2 * 2 * Wco * 4                      # biases (tiny, 2 bufs)
            + b_blk * (H + 2) * (Wci + Wco) * 2)   # padded bf16 scratches
    vmem_limit = int(min(64 << 20, max(32 << 20, 4 * need)))

    return pl.pallas_call(
        _fused_conv_block_kernel,
        out_shape=jax.ShapeDtypeStruct((N, H, Wco), out_dtype),
        grid_spec=pltpu.PrefetchScalarGridSpec(
            num_scalar_prefetch=0,
            grid=(n_steps,),
            in_specs=[
                pl.BlockSpec((b_blk, H, Wci), lambda n: (n, 0, 0)),
                # Grid-constant banded weights: single-buffer to halve their
                # VMEM footprint (matters as (W*C)^2 grows / on v7x's 64 MiB).
                pl.BlockSpec((3, Wci, Wco), lambda n: (0, 0, 0),
                             pipeline_mode=pl.Buffered(1)),
                pl.BlockSpec((1, Wco), lambda n: (0, 0)),
                pl.BlockSpec((3, Wco, Wco), lambda n: (0, 0, 0),
                             pipeline_mode=pl.Buffered(1)),
                pl.BlockSpec((1, Wco), lambda n: (0, 0)),
            ],
            out_specs=pl.BlockSpec((b_blk, H, Wco), lambda n: (n, 0, 0)),
            scratch_shapes=[
                pltpu.VMEM((b_blk * (H + 2), Wci), jnp.bfloat16),  # padded l1 in
                pltpu.VMEM((b_blk * (H + 2), Wco), jnp.bfloat16),  # padded l1 out
            ],
        ),
        compiler_params=pltpu.CompilerParams(
            dimension_semantics=("parallel",),
            vmem_limit_bytes=vmem_limit,
        ),
    )(x_flat, w1b, b1t, w2b, b2t)


# --------------------------------------------------------------------------
# One-time parameter preparation (hoisted out of the per-forward path).
# --------------------------------------------------------------------------
def _fold_bn_into_conv(w, b, gamma, beta, mean, var, eps=1e-5):
    """Fold eval-mode BatchNorm (+conv bias) into the conv weight and a bias."""
    scale = gamma / jnp.sqrt(var + eps)           # (Co,)
    w_f = w * scale                               # broadcast over last dim (Co)
    b_f = scale * (b - mean) + beta
    return w_f, b_f


def _banded_conv_weight(w, W):
    """Fold the 3 horizontal (dx) taps of a 3x3 conv into a banded matrix.

    w: (3, 3, Ci, Co). Returns (3, W*Ci, W*Co) such that, with X the
    row-flattened image X[h, x*Ci + ci] (zero rows above/below only), the
    'same' conv is  Y[h, w*Co + co] = sum_dy (Xpad[h+dy, :] @ out[dy]).
    Out-of-image dx taps are simply absent (== multiplying zero padding).
    """
    _, _, Ci, Co = w.shape
    mats = []
    for dy in range(3):
        m = jnp.zeros((W * Ci, W * Co), w.dtype)
        for dx in range(3):
            # output column w reads input column w + dx - 1
            shift = jnp.eye(W, k=1 - dx, dtype=w.dtype)
            m = m + jnp.kron(shift, w[dy, dx])
        mats.append(m)
    return jnp.stack(mats, axis=0)


def prepare_conv_block_params(params, W, eps=1e-5):
    """BN fold + banding + bf16 cast + bias tiling. Run ONCE per weight load."""
    w1f, b1f = _fold_bn_into_conv(params["w1"], params["b1"], params["gamma1"],
                                  params["beta1"], params["mean1"],
                                  params["var1"], eps)
    w2f, b2f = _fold_bn_into_conv(params["w2"], params["b2"], params["gamma2"],
                                  params["beta2"], params["mean2"],
                                  params["var2"], eps)
    return {
        "w1": _banded_conv_weight(w1f, W).astype(jnp.bfloat16),  # (3, W*Ci, W*Co)
        "w2": _banded_conv_weight(w2f, W).astype(jnp.bfloat16),  # (3, W*Co, W*Co)
        "b1": jnp.tile(b1f, W).reshape(1, -1).astype(jnp.float32),
        "b2": jnp.tile(b2f, W).reshape(1, -1).astype(jnp.float32),
    }


def init_conv_block_params(key, ch_in, ch_out, dtype=jnp.float32):
    """Deterministic synthetic params matching the PyTorch module's shapes."""
    ks = jax.random.split(key, 10)

    def w_init(k, cin, cout):
        fan_in = cin * 9
        return (jax.random.normal(k, (3, 3, cin, cout), dtype)
                / jnp.sqrt(jnp.asarray(fan_in, dtype)))

    return {
        "w1": w_init(ks[0], ch_in, ch_out),
        "b1": 0.1 * jax.random.normal(ks[1], (ch_out,), dtype),
        "gamma1": 1.0 + 0.1 * jax.random.normal(ks[2], (ch_out,), dtype),
        "beta1": 0.1 * jax.random.normal(ks[3], (ch_out,), dtype),
        "mean1": 0.1 * jax.random.normal(ks[4], (ch_out,), dtype),
        "var1": 1.0 + 0.1 * jnp.abs(jax.random.normal(ks[5], (ch_out,), dtype)),
        "w2": w_init(ks[6], ch_out, ch_out),
        "b2": 0.1 * jax.random.normal(ks[7], (ch_out,), dtype),
        "gamma2": 1.0 + 0.1 * jax.random.normal(ks[8], (ch_out,), dtype),
        "beta2": 0.1 * jax.random.normal(ks[9], (ch_out,), dtype),
        "mean2": jnp.zeros((ch_out,), dtype),
        "var2": jnp.ones((ch_out,), dtype),
    }


# --------------------------------------------------------------------------
# Forward pass (NCHW in / NCHW out, like PyTorch).
# --------------------------------------------------------------------------
@jax.jit
def conv_block_forward(x_nchw, prepared):
    N, Ci, H, W = x_nchw.shape
    Co = prepared["b1"].shape[1] // W

    # NCHW -> (N, H, W*Ci) lane-dense bf16 (transpose + cast fused by XLA).
    # TODO(synk): if the surrounding model stays NHWC this transpose goes away.
    x_flat = (jnp.transpose(x_nchw, (0, 2, 3, 1))
              .reshape(N, H, W * Ci).astype(jnp.bfloat16))

    b_blk = _pick_batch_block(N, H)
    out_flat = conv_block_pallas(x_flat, prepared["w1"], prepared["b1"],
                                 prepared["w2"], prepared["b2"],
                                 H=H, W=W, ci=Ci, co=Co,
                                 out_dtype=x_nchw.dtype, b_blk=b_blk)

    out = out_flat.reshape(N, H, W, Co)
    return jnp.transpose(out, (0, 3, 1, 2))                  # NHWC -> NCHW


# --------------------------------------------------------------------------
# Pure-JAX f32 reference (tolerance check of the bf16-operand kernel).
# --------------------------------------------------------------------------
def conv_block_reference(x_nchw, params, eps=1e-5):
    x = jnp.transpose(x_nchw, (0, 2, 3, 1))  # NHWC

    def layer(x, w, b, gamma, beta, mean, var):
        y = jax.lax.conv_general_dilated(
            x, w, window_strides=(1, 1), padding="SAME",
            dimension_numbers=("NHWC", "HWIO", "NHWC"),
            precision=jax.lax.Precision.HIGHEST)
        y = y + b
        y = (y - mean) / jnp.sqrt(var + eps) * gamma + beta
        return jnp.maximum(y, 0.0)

    x = layer(x, params["w1"], params["b1"], params["gamma1"], params["beta1"],
              params["mean1"], params["var1"])
    x = layer(x, params["w2"], params["b2"], params["gamma2"], params["beta2"],
              params["mean2"], params["var2"])
    return jnp.transpose(x, (0, 3, 1, 2))


if __name__ == "__main__":
    key = jax.random.PRNGKey(0)
    k_x, k_p = jax.random.split(key)

    N, CH_IN, CH_OUT, HW = 2, 4, 8, 16
    x = jax.random.normal(k_x, (N, CH_IN, HW, HW), jnp.float32)  # NCHW
    params = init_conv_block_params(k_p, CH_IN, CH_OUT)

    # One-time weight preprocessing (hoisted out of the forward path).
    prepared = prepare_conv_block_params(params, HW)

    out = jax.block_until_ready(conv_block_forward(x, prepared))

    assert out.shape == (N, CH_OUT, HW, HW), out.shape
    assert bool(jnp.all(out >= 0.0)), "ReLU output must be non-negative"

    ref = jax.block_until_ready(conv_block_reference(x, params))
    err = float(jnp.max(jnp.abs(out - ref)))
    assert err < 5e-2, f"max abs error vs f32 reference too large: {err}"

    print("KERNEL_OK")
</pallas_src>

<mosaic_0001>
module attributes {stable_mosaic.version = 11 : i64} {
  func.func @_fused_conv_block_kernel(%arg0: i32, %arg1: memref<2x16x64xbf16, #tpu.memory_space<vmem>>, %arg2: memref<3x64x128xbf16, #tpu.memory_space<vmem>>, %arg3: memref<1x128xf32, #tpu.memory_space<vmem>>, %arg4: memref<3x128x128xbf16, #tpu.memory_space<vmem>>, %arg5: memref<1x128xf32, #tpu.memory_space<vmem>>, %arg6: memref<2x16x128xf32, #tpu.memory_space<vmem>>, %arg7: memref<36x64xbf16, #tpu.memory_space<vmem>>, %arg8: memref<36x128xbf16, #tpu.memory_space<vmem>>) attributes {dimension_semantics = [#tpu.dimension_semantics<parallel>], iteration_bounds = array<i64: 1>, scalar_prefetch = 0 : i64, scratch_operands = 2 : i64, tpu.core_type = #tpu.core_type<tc>, window_params = [{transform_indices = @transform_0, window_bounds = array<i64: 2, 16, 64>}, {pipeline_mode = #tpu.pipeline_mode<synchronous>, transform_indices = @transform_1, window_bounds = array<i64: 3, 64, 128>}, {pipeline_mode = #tpu.pipeline_mode<synchronous>, transform_indices = @transform_2, window_bounds = array<i64: 1, 128>}, {pipeline_mode = #tpu.pipeline_mode<synchronous>, transform_indices = @transform_3, window_bounds = array<i64: 3, 128, 128>}, {pipeline_mode = #tpu.pipeline_mode<synchronous>, transform_indices = @transform_4, window_bounds = array<i64: 1, 128>}, {transform_indices = @transform_5, window_bounds = array<i64: 2, 16, 128>}]} {
    %cst = arith.constant 0.000000e+00 : bf16
    %0 = vector.broadcast %cst : bf16 to vector<1x64xbf16>
    %cst_0 = arith.constant 0.000000e+00 : bf16
    %1 = vector.broadcast %cst_0 : bf16 to vector<1x128xbf16>
    %c0 = arith.constant 0 : index
    %c0_1 = arith.constant 0 : index
    %2 = vector.load %arg7[%c0, %c0_1] : memref<36x64xbf16, #tpu.memory_space<vmem>>, vector<1x64xbf16>
    tpu.vector_store %arg7[%c0, %c0_1], %0 {strides = array<i32>} : memref<36x64xbf16, #tpu.memory_space<vmem>>, vector<1x64xbf16>,
    %c17 = arith.constant 17 : index
    %c0_2 = arith.constant 0 : index
    %3 = vector.load %arg7[%c17, %c0_2] : memref<36x64xbf16, #tpu.memory_space<vmem>>, vector<1x64xbf16>
    tpu.vector_store %arg7[%c17, %c0_2], %0 {strides = array<i32>} : memref<36x64xbf16, #tpu.memory_space<vmem>>, vector<1x64xbf16>,
    %c0_3 = arith.constant 0 : index
    %c0_4 = arith.constant 0 : index
    %4 = vector.load %arg8[%c0_3, %c0_4] : memref<36x128xbf16, #tpu.memory_space<vmem>>, vector<1x128xbf16>
    tpu.vector_store %arg8[%c0_3, %c0_4], %1 {strides = array<i32>} : memref<36x128xbf16, #tpu.memory_space<vmem>>, vector<1x128xbf16>,
    %c17_5 = arith.constant 17 : index
    %c0_6 = arith.constant 0 : index
    %5 = vector.load %arg8[%c17_5, %c0_6] : memref<36x128xbf16, #tpu.memory_space<vmem>>, vector<1x128xbf16>
    tpu.vector_store %arg8[%c17_5, %c0_6], %1 {strides = array<i32>} : memref<36x128xbf16, #tpu.memory_space<vmem>>, vector<1x128xbf16>,
    %c0_7 = arith.constant 0 : index
    %c0_8 = arith.constant 0 : index
    %c0_9 = arith.constant 0 : index
    %6 = vector.load %arg1[%c0_7, %c0_8, %c0_9] : memref<2x16x64xbf16, #tpu.memory_space<vmem>>, vector<1x16x64xbf16>
    %7 = vector.shape_cast %6 : vector<1x16x64xbf16> to vector<16x64xbf16>
    %c1 = arith.constant 1 : index
    %c0_10 = arith.constant 0 : index
    %8 = vector.load %arg7[%c1, %c0_10] : memref<36x64xbf16, #tpu.memory_space<vmem>>, vector<16x64xbf16>
    tpu.vector_store %arg7[%c1, %c0_10], %7 {strides = array<i32>} : memref<36x64xbf16, #tpu.memory_space<vmem>>, vector<16x64xbf16>,
    %c18 = arith.constant 18 : index
    %c0_11 = arith.constant 0 : index
    %9 = vector.load %arg7[%c18, %c0_11] : memref<36x64xbf16, #tpu.memory_space<vmem>>, vector<1x64xbf16>
    tpu.vector_store %arg7[%c18, %c0_11], %0 {strides = array<i32>} : memref<36x64xbf16, #tpu.memory_space<vmem>>, vector<1x64xbf16>,
    %c35 = arith.constant 35 : index
    %c0_12 = arith.constant 0 : index
    %10 = vector.load %arg7[%c35, %c0_12] : memref<36x64xbf16, #tpu.memory_space<vmem>>, vector<1x64xbf16>
    tpu.vector_store %arg7[%c35, %c0_12], %0 {strides = array<i32>} : memref<36x64xbf16, #tpu.memory_space<vmem>>, vector<1x64xbf16>,
    %c18_13 = arith.constant 18 : index
    %c0_14 = arith.constant 0 : index
    %11 = vector.load %arg8[%c18_13, %c0_14] : memref<36x128xbf16, #tpu.memory_space<vmem>>, vector<1x128xbf16>
    tpu.vector_store %arg8[%c18_13, %c0_14], %1 {strides = array<i32>} : memref<36x128xbf16, #tpu.memory_space<vmem>>, vector<1x128xbf16>,
    %c35_15 = arith.constant 35 : index
    %c0_16 = arith.constant 0 : index
    %12 = vector.load %arg8[%c35_15, %c0_16] : memref<36x128xbf16, #tpu.memory_space<vmem>>, vector<1x128xbf16>
    tpu.vector_store %arg8[%c35_15, %c0_16], %1 {strides = array<i32>} : memref<36x128xbf16, #tpu.memory_space<vmem>>, vector<1x128xbf16>,
    %c1_17 = arith.constant 1 : index
    %c0_18 = arith.constant 0 : index
    %c0_19 = arith.constant 0 : index
    %13 = vector.load %arg1[%c1_17, %c0_18, %c0_19] : memref<2x16x64xbf16, #tpu.memory_space<vmem>>, vector<1x16x64xbf16>
    %14 = vector.shape_cast %13 : vector<1x16x64xbf16> to vector<16x64xbf16>
    %c19 = arith.constant 19 : index
    %c0_20 = arith.constant 0 : index
    %15 = vector.load %arg7[%c19, %c0_20] : memref<36x64xbf16, #tpu.memory_space<vmem>>, vector<16x64xbf16>
    tpu.vector_store %arg7[%c19, %c0_20], %14 {strides = array<i32>} : memref<36x64xbf16, #tpu.memory_space<vmem>>, vector<16x64xbf16>,
    %cst_21 = arith.constant 0.000000e+00 : f32
    %16 = vector.broadcast %cst_21 : f32 to vector<34x128xf32>
    %c0_22 = arith.constant 0 : index
    %c0_23 = arith.constant 0 : index
    %17 = vector.load %arg7[%c0_22, %c0_23] : memref<36x64xbf16, #tpu.memory_space<vmem>>, vector<34x64xbf16>
    %c0_24 = arith.constant 0 : index
    %c0_25 = arith.constant 0 : index
    %c0_26 = arith.constant 0 : index
    %18 = vector.load %arg2[%c0_24, %c0_25, %c0_26] : memref<3x64x128xbf16, #tpu.memory_space<vmem>>, vector<1x64x128xbf16>
    %19 = vector.shape_cast %18 : vector<1x64x128xbf16> to vector<64x128xbf16>
    %cst_27 = arith.constant dense<0.000000e+00> : vector<34x128xf32>
    %20 = tpu.matmul %17, %19, %cst_27 {dimension_numbers = #tpu.dot_dimension_numbers<[1], [0], [0], [1], [0, 0, 1, 1], [], []>} : vector<34x64xbf16>, vector<64x128xbf16>, vector<34x128xf32> -> vector<34x128xf32>
    %21 = arith.addf %16, %20 : vector<34x128xf32>
    %c1_28 = arith.constant 1 : index
    %c0_29 = arith.constant 0 : index
    %22 = vector.load %arg7[%c1_28, %c0_29] : memref<36x64xbf16, #tpu.memory_space<vmem>>, vector<34x64xbf16>
    %c1_30 = arith.constant 1 : index
    %c0_31 = arith.constant 0 : index
    %c0_32 = arith.constant 0 : index
    %23 = vector.load %arg2[%c1_30, %c0_31, %c0_32] : memref<3x64x128xbf16, #tpu.memory_space<vmem>>, vector<1x64x128xbf16>
    %24 = vector.shape_cast %23 : vector<1x64x128xbf16> to vector<64x128xbf16>
    %cst_33 = arith.constant dense<0.000000e+00> : vector<34x128xf32>
    %25 = tpu.matmul %22, %24, %cst_33 {dimension_numbers = #tpu.dot_dimension_numbers<[1], [0], [0], [1], [0, 0, 1, 1], [], []>} : vector<34x64xbf16>, vector<64x128xbf16>, vector<34x128xf32> -> vector<34x128xf32>
    %26 = arith.addf %21, %25 : vector<34x128xf32>
    %c2 = arith.constant 2 : index
    %c0_34 = arith.constant 0 : index
    %27 = vector.load %arg7[%c2, %c0_34] : memref<36x64xbf16, #tpu.memory_space<vmem>>, vector<34x64xbf16>
    %c2_35 = arith.constant 2 : index
    %c0_36 = arith.constant 0 : index
    %c0_37 = arith.constant 0 : index
    %28 = vector.load %arg2[%c2_35, %c0_36, %c0_37] : memref<3x64x128xbf16, #tpu.memory_space<vmem>>, vector<1x64x128xbf16>
    %29 = vector.shape_cast %28 : vector<1x64x128xbf16> to vector<64x128xbf16>
    %cst_38 = arith.constant dense<0.000000e+00> : vector<34x128xf32>
    %30 = tpu.matmul %27, %29, %cst_38 {dimension_numbers = #tpu.dot_dimension_numbers<[1], [0], [0], [1], [0, 0, 1, 1], [], []>} : vector<34x64xbf16>, vector<64x128xbf16>, vector<34x128xf32> -> vector<34x128xf32>
    %31 = arith.addf %26, %30 : vector<34x128xf32>
    %c0_39 = arith.constant 0 : index
    %c0_40 = arith.constant 0 : index
    %32 = vector.load %arg3[%c0_39, %c0_40] : memref<1x128xf32, #tpu.memory_space<vmem>>, vector<1x128xf32>
    %33 = vector.broadcast %32 : vector<1x128xf32> to vector<34x128xf32>
    %34 = arith.addf %31, %33 : vector<34x128xf32>
    %cst_41 = arith.constant 0.000000e+00 : f32
    %35 = vector.broadcast %cst_41 : f32 to vector<34x128xf32>
    %36 = arith.maximumf %34, %35 : vector<34x128xf32>
    %37 = vector.extract_strided_slice %36 {offsets = [0, 0], sizes = [16, 128], strides = [1, 1]} : vector<34x128xf32> to vector<16x128xf32>
    %38 = arith.truncf %37 : vector<16x128xf32> to vector<16x128xbf16>
    %c1_42 = arith.constant 1 : index
    %c0_43 = arith.constant 0 : index
    %39 = vector.load %arg8[%c1_42, %c0_43] : memref<36x128xbf16, #tpu.memory_space<vmem>>, vector<16x128xbf16>
    tpu.vector_store %arg8[%c1_42, %c0_43], %38 {strides = array<i32>} : memref<36x128xbf16, #tpu.memory_space<vmem>>, vector<16x128xbf16>,
    %40 = vector.extract_strided_slice %36 {offsets = [18, 0], sizes = [16, 128], strides = [1, 1]} : vector<34x128xf32> to vector<16x128xf32>
    %41 = arith.truncf %40 : vector<16x128xf32> to vector<16x128xbf16>
    %c19_44 = arith.constant 19 : index
    %c0_45 = arith.constant 0 : index
    %42 = vector.load %arg8[%c19_44, %c0_45] : memref<36x128xbf16, #tpu.memory_space<vmem>>, vector<16x128xbf16>
    tpu.vector_store %arg8[%c19_44, %c0_45], %41 {strides = array<i32>} : memref<36x128xbf16, #tpu.memory_space<vmem>>, vector<16x128xbf16>,
    %cst_46 = arith.constant 0.000000e+00 : f32
    %43 = vector.broadcast %cst_46 : f32 to vector<34x128xf32>
    %c0_47 = arith.constant 0 : index
    %c0_48 = arith.constant 0 : index
    %44 = vector.load %arg8[%c0_47, %c0_48] : memref<36x128xbf16, #tpu.memory_space<vmem>>, vector<34x128xbf16>
    %c0_49 = arith.constant 0 : index
    %c0_50 = arith.constant 0 : index
    %c0_51 = arith.constant 0 : index
    %45 = vector.load %arg4[%c0_49, %c0_50, %c0_51] : memref<3x128x128xbf16, #tpu.memory_space<vmem>>, vector<1x128x128xbf16>
    %46 = vector.shape_cast %45 : vector<1x128x128xbf16> to vector<128x128xbf16>
    %cst_52 = arith.constant dense<0.000000e+00> : vector<34x128xf32>
    %47 = tpu.matmul %44, %46, %cst_52 {dimension_numbers = #tpu.dot_dimension_numbers<[1], [0], [0], [1], [0, 0, 1, 1], [], []>} : vector<34x128xbf16>, vector<128x128xbf16>, vector<34x128xf32> -> vector<34x128xf32>
    %48 = arith.addf %43, %47 : vector<34x128xf32>
    %c1_53 = arith.constant 1 : index
    %c0_54 = arith.constant 0 : index
    %49 = vector.load %arg8[%c1_53, %c0_54] : memref<36x128xbf16, #tpu.memory_space<vmem>>, vector<34x128xbf16>
    %c1_55 = arith.constant 1 : index
    %c0_56 = arith.constant 0 : index
    %c0_57 = arith.constant 0 : index
    %50 = vector.load %arg4[%c1_55, %c0_56, %c0_57] : memref<3x128x128xbf16, #tpu.memory_space<vmem>>, vector<1x128x128xbf16>
    %51 = vector.shape_cast %50 : vector<1x128x128xbf16> to vector<128x128xbf16>
    %cst_58 = arith.constant dense<0.000000e+00> : vector<34x128xf32>
    %52 = tpu.matmul %49, %51, %cst_58 {dimension_numbers = #tpu.dot_dimension_numbers<[1], [0], [0], [1], [0, 0, 1, 1], [], []>} : vector<34x128xbf16>, vector<128x128xbf16>, vector<34x128xf32> -> vector<34x128xf32>
    %53 = arith.addf %48, %52 : vector<34x128xf32>
    %c2_59 = arith.constant 2 : index
    %c0_60 = arith.constant 0 : index
    %54 = vector.load %arg8[%c2_59, %c0_60] : memref<36x128xbf16, #tpu.memory_space<vmem>>, vector<34x128xbf16>
    %c2_61 = arith.constant 2 : index
    %c0_62 = arith.constant 0 : index
    %c0_63 = arith.constant 0 : index
    %55 = vector.load %arg4[%c2_61, %c0_62, %c0_63] : memref<3x128x128xbf16, #tpu.memory_space<vmem>>, vector<1x128x128xbf16>
    %56 = vector.shape_cast %55 : vector<1x128x128xbf16> to vector<128x128xbf16>
    %cst_64 = arith.constant dense<0.000000e+00> : vector<34x128xf32>
    %57 = tpu.matmul %54, %56, %cst_64 {dimension_numbers = #tpu.dot_dimension_numbers<[1], [0], [0], [1], [0, 0, 1, 1], [], []>} : vector<34x128xbf16>, vector<128x128xbf16>, vector<34x128xf32> -> vector<34x128xf32>
    %58 = arith.addf %53, %57 : vector<34x128xf32>
    %c0_65 = arith.constant 0 : index
    %c0_66 = arith.constant 0 : index
    %59 = vector.load %arg5[%c0_65, %c0_66] : memref<1x128xf32, #tpu.memory_space<vmem>>, vector<1x128xf32>
    %60 = vector.broadcast %59 : vector<1x128xf32> to vector<34x128xf32>
    %61 = arith.addf %58, %60 : vector<34x128xf32>
    %cst_67 = arith.constant 0.000000e+00 : f32
    %62 = vector.broadcast %cst_67 : f32 to vector<34x128xf32>
    %63 = arith.maximumf %61, %62 : vector<34x128xf32>
    %64 = vector.extract_strided_slice %63 {offsets = [0, 0], sizes = [16, 128], strides = [1, 1]} : vector<34x128xf32> to vector<16x128xf32>
    %c0_68 = arith.constant 0 : index
    %c0_69 = arith.constant 0 : index
    %c0_70 = arith.constant 0 : index
    %65 = vector.load %arg6[%c0_68, %c0_69, %c0_70] : memref<2x16x128xf32, #tpu.memory_space<vmem>>, vector<1x16x128xf32>
    %66 = vector.shape_cast %65 : vector<1x16x128xf32> to vector<16x128xf32>
    %67 = vector.shape_cast %64 : vector<16x128xf32> to vector<1x16x128xf32>
    tpu.vector_store %arg6[%c0_68, %c0_69, %c0_70], %67 {strides = array<i32>} : memref<2x16x128xf32, #tpu.memory_space<vmem>>, vector<1x16x128xf32>,
    %68 = vector.extract_strided_slice %63 {offsets = [18, 0], sizes = [16, 128], strides = [1, 1]} : vector<34x128xf32> to vector<16x128xf32>
    %c1_71 = arith.constant 1 : index
    %c0_72 = arith.constant 0 : index
    %c0_73 = arith.constant 0 : index
    %69 = vector.load %arg6[%c1_71, %c0_72, %c0_73] : memref<2x16x128xf32, #tpu.memory_space<vmem>>, vector<1x16x128xf32>
    %70 = vector.shape_cast %69 : vector<1x16x128xf32> to vector<16x128xf32>
    %71 = vector.shape_cast %68 : vector<16x128xf32> to vector<1x16x128xf32>
    tpu.vector_store %arg6[%c1_71, %c0_72, %c0_73], %71 {strides = array<i32>} : memref<2x16x128xf32, #tpu.memory_space<vmem>>, vector<1x16x128xf32>,
    return
  }
  func.func @transform_0(%arg0: i32) -> (i32, i32, i32) {
    %c0_i32 = arith.constant 0 : i32
    %c0_i32_0 = arith.constant 0 : i32
    %c0_i32_1 = arith.constant 0 : i32
    return %arg0, %c0_i32, %c0_i32_0 : i32, i32, i32
  }
  func.func @transform_1(%arg0: i32) -> (i32, i32, i32) {
    %c0_i32 = arith.constant 0 : i32
    %c0_i32_0 = arith.constant 0 : i32
    %c0_i32_1 = arith.constant 0 : i32
    %c0_i32_2 = arith.constant 0 : i32
    return %c0_i32, %c0_i32_0, %c0_i32_1 : i32, i32, i32
  }
  func.func @transform_2(%arg0: i32) -> (i32, i32) {
    %c0_i32 = arith.constant 0 : i32
    %c0_i32_0 = arith.constant 0 : i32
    %c0_i32_1 = arith.constant 0 : i32
    return %c0_i32, %c0_i32_0 : i32, i32
  }
  func.func @transform_3(%arg0: i32) -> (i32, i32, i32) {
    %c0_i32 = arith.constant 0 : i32
    %c0_i32_0 = arith.constant 0 : i32
    %c0_i32_1 = arith.constant 0 : i32
    %c0_i32_2 = arith.constant 0 : i32
    return %c0_i32, %c0_i32_0, %c0_i32_1 : i32, i32, i32
  }
  func.func @transform_4(%arg0: i32) -> (i32, i32) {
    %c0_i32 = arith.constant 0 : i32
    %c0_i32_0 = arith.constant 0 : i32
    %c0_i32_1 = arith.constant 0 : i32
    return %c0_i32, %c0_i32_0 : i32, i32
  }
  func.func @transform_5(%arg0: i32) -> (i32, i32, i32) {
    %c0_i32 = arith.constant 0 : i32
    %c0_i32_0 = arith.constant 0 : i32
    %c0_i32_1 = arith.constant 0 : i32
    return %arg0, %c0_i32, %c0_i32_0 : i32, i32, i32
  }
}

</mosaic_0001>

<bundles_post_ra>
// kernel: conv_block_forward.1
= control target key start
LH: loop header
LB: loop body
LE: loop exit
PB: predicated region body
PF: predicated region fallthrough
CT: control target
= control target key end

     0   :  { %v1410_v0 = vmov 0.0   ;;  %vm1411_vm0 = vmmov 0   ;;  %vm21_vm1 = vcmask 516096   ;;  %vm22_vm2 = vsmask.f32 256  ;;  %s1750_s1 = inlined_call_operand.vmem [shape: bf16[3,64,128], index: 1, kind: input, shape index: {}]   ;;  %s1751_s0 = inlined_call_operand.vmem [shape: bf16[2,16,64], index: 0, kind: input, shape index: {}]   ;;  %s1752_s3 = inlined_call_operand.vmem [shape: bf16[3,128,128], index: 3, kind: input, shape index: {}]   ;;  %s1753_s2 = inlined_call_operand.vmem [shape: f32[1,128], index: 2, kind: input, shape index: {}]   ;;  %s1754_s4 = inlined_call_operand.vmem [shape: f32[1,128], index: 4, kind: input, shape index: {}]   ;;  %s1755_s5 = inlined_call_operand.vmem [shape: f32[2,16,128], index: 5, kind: output, shape index: {}]  }
   0x1   :  { %1218 = vmatprep.subr.bf16.mxu0 %v1410_v0  ;;  %v1364_v1 = vld [vmem:[%s1750_s1 + $0x20] sm:$0xff]   ;;  %1238 = vmatprep.subr.bf16.mxu1 %v1410_v0  ;;  %v1366_v3 = vld [vmem:[%s1750_s1 + $0x28] sm:$0xff]   ;;  %v1368_v5 = vld [vmem:[%s1750_s1 + $0x30] sm:$0xff]   ;;  %vm27_vm4 = vsmask.f32 7938  ;;  %vm75_vm6 = vcmask 517121  }
   0x2   :  { %v1365_v2 = vld [vmem:[%s1750_s1] sm:$0xff]   ;;  %1226 = vmatprep.mubr.msk.bf16.mxu0 %vm1411_vm0, %v1410_v0  ;;  %1246 = vmatprep.mubr.msk.bf16.mxu1 %vm1411_vm0, %v1410_v0  ;;  %v1367_v4 = vld [vmem:[%s1750_s1 + $0x8] sm:$0xff]   ;;  %v1369_v6 = vld [vmem:[%s1750_s1 + $0x10] sm:$0xff]   ;;  %vm43_vm7 = vsmask.f32 4368  ;;  %vm65_vm9 = vcmask 519168  }
   0x3   :  { %1219 = vmatpush3.bf16.msra.mxu0 %v1364_v1  ;;  %1239 = vmatpush3.bf16.msra.mxu1 %v1365_v2  ;;  %v1370_v7 = vld [vmem:[%s1750_s1 + $0x38] sm:$0xff]   ;;  %vm1475_vm3 = vmand %vm21_vm1, %vm22_vm2  ;;  %v24_v9 = vld [vmem:[#allocation2] sm:$0x1]  ;;  %vm76_vm8 = vsmask.f32 1280  ;;  %vm122_vm11 = vcmask 519169  }
   0x4   :  { %1220 = vmatprep.subr.bf16.mxu0 %v1410_v0  ;;  %1240 = vmatprep.subr.bf16.mxu1 %v1410_v0  ;;  %v29_v10 = vld [vmem:[#allocation2 + $0x8] sm:$0x1]  ;;  %v25_v11 = vsel %vm1475_vm3, 0, %v24_v9  ;;  %vm28_vm5 = vmand %vm21_vm1, %vm27_vm4  ;;  %v41_v12 = vld [vmem:[%s1751_s0] sm:$0xf] }
   0x5   :  { %v42_v13 = vld [vmem:[%s1751_s0 + $0x4] sm:$0xf]  ;;  %v1371_v14 = vld [vmem:[%s1750_s1 + $0x18] sm:$0xff]   ;;  %26 = vst [vmem:[#allocation2] sm:$0x1] %v25_v11  ;;  %v30_v15 = vsel %vm28_vm5, 0, %v29_v10  ;;  %vm77_vm10 = vmand %vm75_vm6, %vm76_vm8 }
   0x6   :  { %v46_v16 = vshrl.u32 %v41_v12, 16  ;;  %v49_v17 = vshll.u32 %v41_v12, 16  ;;  %31 = vst [vmem:[#allocation2 + $0x8] sm:$0x1] %v30_v15  ;;  %v54_v18 = vshrl.u32 %v42_v13, 16  ;;  %v57_v19 = vshll.u32 %v42_v13, 16  ;;  %vm1504_vm13 = vmor %vm22_vm2, %vm43_vm7 }
   0x7   :  { %1221 = vmatpush3.bf16.msra.mxu0 %v1366_v3  ;;  %1241 = vmatpush3.bf16.msra.mxu1 %v1367_v4  ;;  %v78_v20 = vld [vmem:[#allocation2 + $0x8] sm:$0x2]  ;;  %vm81_vm12 = vsmask.f32 7942  ;;  %v1045_v25 = vld [vmem:[%s1751_s0 + $0xc] sm:$0xf]  ;;  %vm1511_vm14 = vmand %vm65_vm9, %vm27_vm4 }
   0x8   :  { %1222 = vmatprep.subr.bf16.mxu0 %v1410_v0  ;;  %1242 = vmatprep.subr.bf16.mxu1 %v1410_v0  ;;  %v48_v21 = vrot.slane %v46_v16, 7  ;;  %v1044_v22 = vld [vmem:[%s1751_s0 + $0x8] sm:$0xf]  ;;  %v56_v23 = vrot.slane %v54_v18, 7  ;;  %v79_v24 = vsel %vm77_vm10, 0, %v78_v20  ;;  %v110_v34 = vshrl.u32 %v1045_v25, 16  ;;  %vm1517_vm1 = vmand %vm75_vm6, %vm81_vm12 }
   0x9   :  { %80 = vst [vmem:[#allocation2 + $0x8] sm:$0x2] %v79_v24  ;;  %v101_v29 = vshrl.u32 %v1044_v22, 16  ;;  %v104_v30 = vshll.u32 %v1044_v22, 16  ;;  %v113_v35 = vshll.u32 %v1045_v25, 16  ;;  %vm1526_vm5 = vmand %vm122_vm11, %vm81_vm12  ;;  %vm128_vm7 = vcmask 517120  }
   0xa   :  { %v51_v27 = vor.u32 %v49_v17, %v48_v21  ;;  %v52_v28 = vrot.slane %v48_v21, 4  ;;  %v59_v31 = vor.u32 %v57_v19, %v56_v23  ;;  %v61_v32 = vrot.slane %v56_v23, 4  ;;  %v83_v47 = vld [vmem:[#allocation2 + $0x10] sm:$0x2]  ;;  %v1375_v9 = vld [vmem:[%s1750_s1 + $0x48] sm:$0xff]   ;;  %v1379_v17 = vld [vmem:[%s1750_s1 + $0x58] sm:$0xff]  }
   0xb   :  { %1223 = vmatpush3.bf16.msra.mxu0 %v1368_v5  ;;  %1243 = vmatpush3.bf16.msra.mxu1 %v1369_v6  ;;  %vm98_vm15 = vsmask.f32 5392  ;;  %v103_v36 = vrot.slane %v101_v29, 6  ;;  %v106_v37 = vrot.slane %v104_v30, 7  ;;  %v112_v41 = vrot.slane %v110_v34, 6  ;;  %v1374_v5 = vld [vmem:[%s1750_s1 + $0x40] sm:$0xff]  }
   0xc   :  { %1224 = vmatprep.subr.bf16.mxu0 %v1410_v0  ;;  %1244 = vmatprep.subr.bf16.mxu1 %v1410_v0  ;;  %v60_v39 = vsel %vm1504_vm13, %v52_v28, %v59_v31  ;;  %v67_v40 = vld [vmem:[#allocation2] sm:$0xf]  ;;  %v115_v42 = vrot.slane %v113_v35, 7  ;;  %vm99_vm6 = vmor %vm76_vm8, %vm98_vm15  ;;  %v84_v50 = vsel %vm1517_vm1, 0, %v83_v47  ;;  %vm217_vm10 = vcmask 523264   ;;  %v1377_v15 = vld [vmem:[%s1750_s1 + $0x50] sm:$0xff]  }
   0xd   :  { %v68_v44 = vsel %vm1511_vm14, %v51_v27, %v67_v40  ;;  %71 = vst.msk [vmem:[#allocation2 + $0x4] sm:$0xf] %vm65_vm9, %v60_v39  ;;  %v72_v45 = vld [vmem:[#allocation2 + $0x8] sm:$0x1]  ;;  %v107_v46 = vor.u32 %v106_v37, %v103_v36  ;;  %85 = vst [vmem:[#allocation2 + $0x10] sm:$0x2] %v84_v50 }
   0xe   :  { %69 = vst [vmem:[#allocation2] sm:$0xf] %v68_v44  ;;  %v73_v48 = vsel %vm1475_vm3, %v61_v32, %v72_v45  ;;  %v116_v49 = vor.u32 %v115_v42, %v112_v41  ;;  %vm129_vm3 = vmand %vm128_vm7, %vm76_vm8  ;;  %vm386_vm11 = vcmask 1046528   ;;  %v1381_v27 = vld [vmem:[%s1752_s3] sm:$0xff]   ;;  %vm32_vm14 = vcmask 1040384   ;;  %v1382_v31 = vld [vmem:[%s1752_s3 + $0x8] sm:$0xff]  }
   0xf   :  { %1225 = vmatpush3.bf16.msra.mxu0 %v1370_v7  ;;  %1245 = vmatpush3.bf16.msra.mxu1 %v1371_v14  ;;  %74 = vst [vmem:[#allocation2 + $0x8] sm:$0x1] %v73_v48  ;;  %v108_v51 = vrot.slane %v107_v46, 4  ;;  %vm1594_vm15 = vmand %vm32_vm14, %vm22_vm2  ;;  %v34_v29 = vld [vmem:[#allocation3] sm:$0x1]  ;;  %v1384_v33 = vld [vmem:[%s1752_s3 + $0x40] sm:$0xff]  }
  0x10   :  { %1258 = vmatprep.subr.bf16.mxu0 %v1410_v0  ;;  %1278 = vmatprep.subr.bf16.mxu1 %v1410_v0  ;;  %v124_v52 = vld [vmem:[#allocation2 + $0x8] sm:$0xe]  ;;  %v118_v55 = vrot.slane %v116_v49, 4  ;;  %v35_v30 = vsel %vm1594_vm15, 0, %v34_v29  ;;  %v1383_v32 = vld [vmem:[%s1752_s3 + $0x10] sm:$0xff]   ;;  %vm37_vm2 = vmand %vm32_vm14, %vm27_vm4  ;;  %vm86_vm1 = vcmask 1041409  }
  0x11   :  { %v117_v53 = vsel %vm99_vm6, %v108_v51, %v116_v49  ;;  %v125_v54 = vsel %vm1526_vm5, %v107_v46, %v124_v52  ;;  %36 = vst [vmem:[#allocation3] sm:$0x1] %v35_v30  ;;  %v38_v34 = vld [vmem:[#allocation3 + $0x8] sm:$0x1]  ;;  %v1386_v37 = vld [vmem:[%s1752_s3 + $0x48] sm:$0xff]   ;;  %v1387_v38 = vld [vmem:[%s1752_s3 + $0x20] sm:$0xff]  }
  0x12   :  { %126 = vst [vmem:[#allocation2 + $0x8] sm:$0xe] %v125_v54  ;;  %127 = vst.msk [vmem:[#allocation2 + $0xc] sm:$0xf] %vm65_vm9, %v117_v53  ;;  %vm169_vm9 = vsmask.f32 7424 }
  0x13   :  { %v1385_v35 = vld [vmem:[%s1752_s3 + $0x18] sm:$0xff]   ;;  %v39_v36 = vsel %vm37_vm2, 0, %v38_v34  ;;  %vm87_vm5 = vmand %vm86_vm1, %vm76_vm8  ;;  %v1388_v41 = vld [vmem:[%s1752_s3 + $0x50] sm:$0xff]   ;;  %vm529_vm7 = vcmask 1043456  }
  0x14   :  { %v134_v56 = vld [vmem:[#allocation2 + $0x4] sm:$0xf]  ;;  %v130_v59 = vld [vmem:[#allocation2 + $0x10] sm:$0x3]  ;;  %40 = vst [vmem:[#allocation3 + $0x8] sm:$0x1] %v39_v36  ;;  %vm91_vm6 = vmand %vm86_vm1, %vm81_vm12 }
  0x15   :  { %v133_v57 = vld [vmem:[#allocation2] sm:$0xf]  ;;  %v131_v60 = vsel %vm129_vm3, %v118_v55, %v130_v59  ;;  %v88_v39 = vld [vmem:[#allocation3 + $0x8] sm:$0x2]  ;;  %v1389_v42 = vld [vmem:[%s1752_s3 + $0x28] sm:$0xff]  }
  0x16   :  { %v1054_v58 = vcombine.low %v133_v57, %v134_v56  ;;  %132 = vst [vmem:[#allocation2 + $0x10] sm:$0x3] %v131_v60  ;;  %v373_v18 = vld [vmem:[#allocation2] sm:$0xe]  ;;  %v89_v40 = vsel %vm87_vm5, 0, %v88_v39  ;;  %v1390_v43 = vld [vmem:[%s1752_s3 + $0x58] sm:$0xff]   ;;  %vm530_vm3 = vmand %vm529_vm7, %vm27_vm4 }
  0x17   :  { %v1080_v20 = vcombine.low %v373_v18, %v134_v56  ;;  %90 = vst [vmem:[#allocation3 + $0x8] sm:$0x2] %v89_v40  ;;  %v1391_v44 = vld [vmem:[%s1752_s3 + $0x30] sm:$0xff]   ;;  %v92_v45 = vld [vmem:[#allocation3 + $0x10] sm:$0x2]  ;;  %v1393_v48 = vld [vmem:[%s1752_s3 + $0x38] sm:$0xff]  }
  0x18   :  { %v171_v61 = vshrl.u32 %v1054_v58, 16  ;;  %v173_v62 = vshll.u32 %v1054_v58, 16  ;;  %1247 = vmatmul.mubr.msk.bf16.vlgmr.msra.gmra.mrb[0].mxu1 %vm217_vm10, %v1054_v58  ;;  %v1392_v46 = vld [vmem:[%s1752_s3 + $0x60] sm:$0xff]   ;;  %v93_v47 = vsel %vm91_vm6, 0, %v92_v45  ;;  %v1395_v49 = vld [vmem:[%s1752_s3 + $0x68] sm:$0xff]   ;;  %v1396_v50 = vld [vmem:[%s1752_s3 + $0x70] sm:$0xff]  }
  0x19   :  { %v1373_v63 = vld [vmem:[#allocation2 + $0x8] sm:$0xff]   ;;  %1250 = vmatprep.mubr.msk.bf16.mxu1 %vm1411_vm0, %v1410_v0  ;;  %v387_v21 = vrot.slane %v1080_v20, 1  ;;  %1279 = vmatpush3.bf16.msra.mxu1 %v1384_v33  ;;  %94 = vst [vmem:[#allocation3 + $0x10] sm:$0x2] %v93_v47  ;;  %v1398_v51 = vld [vmem:[%s1752_s3 + $0x78] sm:$0xff]   ;;  %vm576_vm4 = vcmask 1043457  }
  0x1a   :  { %v175_v1 = vrot.slane %v173_v62, 1  ;;  %v178_v2 = vshll.u32 %v1373_v63, 16  ;;  %v182_v6 = vshrl.u32 %v1373_v63, 16  ;;  %v388_v22 = vrot.slane %v1373_v63, 1  ;;  %1280 = vmatprep.subr.bf16.mxu1 %v1410_v0 }
  0x1c   :  { %v176_v3 = vor.u32 %v175_v1, %v171_v61  ;;  %v180_v4 = vrot.slane %v178_v2, 1  ;;  %v389_v23 = vsel %vm386_vm11, %v387_v21, %v388_v22 }
  0x1d   :  { %v1376_v8 = vld [vmem:[#allocation2 + $0x10] ss:$0 sps:$4 sm:$0x33]   ;;  %1281 = vmatpush3.bf16.msra.mxu1 %v1386_v37 }
  0x1e   :  { %v181_v7 = vsel %vm169_vm9, %v176_v3, %v180_v4  ;;  %v184_v10 = vor.u32 %v182_v6, %v180_v4  ;;  %v186_v11 = vshll.u32 %v1376_v8, 16  ;;  %v1378_v13 = vld [vmem:[#allocation2 + $0x10] ss:$0 sps:$4 sm:$0x11]   ;;  %v190_v16 = vshrl.u32 %v1376_v8, 16  ;;  %1282 = vmatprep.subr.bf16.mxu1 %v1410_v0 }
  0x1f   :  { %1227 = vmatmul.mubr.msk.bf16.vlgmr.msra.gmra.mrb[0].mxu0 %vm217_vm10, %v181_v7  ;;  %v390_v24 = vrot.slane %v1376_v8, 1 }
  0x20   :  { %1251 = vmatmul.mubr.msk.bf16.gmra.mrb[4].mxu1 %vm217_vm10, %v1373_v63  ;;  %1259 = vmatpush3.bf16.msra.mxu0 %v1374_v5  ;;  %v188_v12 = vrot.slane %v186_v11, 1 }
  0x21   :  { %1230 = vmatprep.mubr.msk.bf16.mxu0 %vm1411_vm0, %v1410_v0  ;;  %1260 = vmatprep.subr.bf16.mxu0 %v1410_v0  ;;  %v391_v25 = vsel %vm386_vm11, %v388_v22, %v390_v24 }
  0x22   :  { %1254 = vmatprep.mubr.msk.bf16.mxu1 %vm1411_vm0, %v1410_v0  ;;  %v189_v14 = vsel %vm169_vm9, %v184_v10, %v188_v12  ;;  %v192_v19 = vor.u32 %v190_v16, %v188_v12  ;;  %1283 = vmatpush3.bf16.msra.mxu1 %v1388_v41 }
  0x23   :  { %1284 = vmatprep.subr.bf16.mxu1 %v1410_v0 }
  0x24   :  { %1261 = vmatpush3.bf16.msra.mxu0 %v1375_v9 }
  0x25   :  { %1262 = vmatprep.subr.bf16.mxu0 %v1410_v0 }
  0x26   :  { %1285 = vmatpush3.bf16.msra.mxu1 %v1390_v43  ;;  %v531_v43 = vld [vmem:[#allocation3] sm:$0xf] }
  0x27   :  { %1231 = vmatmul.mubr.msk.bf16.gmra.mrb[4].mxu0 %vm217_vm10, %v189_v14  ;;  %1286 = vmatprep.subr.bf16.mxu1 %v1410_v0 }
  0x28   :  { %1255 = vmatmul.mubr.msk.bf16.gmra.mrb[8].mxu1 %vm217_vm10, %v1378_v13  ;;  %1263 = vmatpush3.bf16.msra.mxu0 %v1377_v15 }
  0x29   :  { %1234 = vmatprep.mubr.msk.bf16.mxu0 %vm1411_vm0, %v1410_v0  ;;  %1264 = vmatprep.subr.bf16.mxu0 %v1410_v0 }
  0x2a   :  { %1294 = vmatprep.mubr.msk.bf16.mxu1 %vm1411_vm0, %v1410_v0  ;;  %1287 = vmatpush3.bf16.msra.mxu1 %v1392_v46 }
  0x2b   :  { %1288 = vmatprep.subr.bf16.mxu1 %v1410_v0 }
  0x2c   :  { %1265 = vmatpush3.bf16.msra.mxu0 %v1379_v17 }
  0x2d   :  { %1306 = vmatprep.subr.bf16.mxu0 %v1410_v0 }
  0x2e   :  { %1289 = vmatpush3.bf16.msra.mxu1 %v1395_v49 }
  0x2f   :  { %1235 = vmatmul.mubr.msk.bf16.gmra.mrb[8].mxu0 %vm217_vm10, %v192_v19  ;;  %1290 = vmatprep.subr.bf16.mxu1 %v1410_v0  ;;  %v1088_v19 = vld [vmem:[%s1753_s2] ss:$0 sm:$0xff] }
  0x30   :  { %1266 = vmatprep.mubr.msk.bf16.mxu0 %vm1411_vm0, %v1410_v0 }
  0x32   :  { %1291 = vmatpush3.bf16.msra.mxu1 %v1396_v50  ;;  %v535_v50 = vld [vmem:[#allocation3 + $0x8] sm:$0x1] }
  0x33   :  { %1292 = vmatprep.subr.bf16.mxu1 %v1410_v0 }
  0x36   :  { %1293 = vmatpush3.bf16.msra.mxu1 %v1398_v51 }
  0x37   :  { %1267 = vmatmul.mubr.msk.bf16.vlgmr.msra.gmra.mrb[12].mxu0 %vm217_vm10, %v389_v23  ;;  %1334 = vmatprep.subr.bf16.mxu1 %v1410_v0 }
  0x38   :  { %1270 = vmatprep.mubr.msk.bf16.mxu0 %vm1411_vm0, %v1410_v0  ;;  %1307 = vmatpush3.bf16.msra.mxu0 %v1381_v27 }
  0x39   :  { %1308 = vmatprep.subr.bf16.mxu0 %v1410_v0 }
  0x3c   :  { %1309 = vmatpush3.bf16.msra.mxu0 %v1382_v31 }
  0x3d   :  { %1310 = vmatprep.subr.bf16.mxu0 %v1410_v0 }
  0x3f   :  { %1271 = vmatmul.mubr.msk.bf16.gmra.mrb[16].mxu0 %vm217_vm10, %v391_v25 }
  0x40   :  { %1274 = vmatprep.mubr.msk.bf16.mxu0 %vm1411_vm0, %v1410_v0  ;;  %1311 = vmatpush3.bf16.msra.mxu0 %v1383_v32 }
  0x41   :  { %1312 = vmatprep.subr.bf16.mxu0 %v1410_v0 }
  0x44   :  { %1313 = vmatpush3.bf16.msra.mxu0 %v1385_v35 }
  0x45   :  { %1314 = vmatprep.subr.bf16.mxu0 %v1410_v0 }
  0x47   :  { %1275 = vmatmul.mubr.msk.bf16.gmra.mrb[20].mxu0 %vm217_vm10, %v390_v24  ;;  %vm577_vm10 = vmand %vm576_vm4, %vm81_vm12  ;;  %vm582_vm12 = vcmask 1041408  }
  0x48   :  { %1322 = vmatprep.mubr.msk.bf16.mxu0 %vm1411_vm0, %v1410_v0  ;;  %1315 = vmatpush3.bf16.msra.mxu0 %v1387_v38  ;;  %vm583_vm14 = vmand %vm582_vm12, %vm76_vm8 }
  0x49   :  { %1316 = vmatprep.subr.bf16.mxu0 %v1410_v0 }
  0x4c   :  { %1317 = vmatpush3.bf16.msra.mxu0 %v1389_v42 }
  0x4d   :  { %1318 = vmatprep.subr.bf16.mxu0 %v1410_v0 }
  0x50   :  { %1319 = vmatpush3.bf16.msra.mxu0 %v1391_v44 }
  0x51   :  { %1320 = vmatprep.subr.bf16.mxu0 %v1410_v0 }
  0x54   :  { %1321 = vmatpush3.bf16.msra.mxu0 %v1393_v48 }
  0xeb   :  { %v351_v52 = vpop.f32.mrb[0].mxu1 }
  0xec   :  { %v1248_v53 = vpop.f32.mrb[1].mxu1 }
  0xed   :  { %v354_v54 = vpop.f32.mrb[2].mxu1 }
  0xee   :  { %v1249_v55 = vpop.f32.mrb[3].mxu1 }
  0xf2   :  { %v261_v56 = vpop.f32.mrb[0].mxu0 }
  0xf3   :  { %v359_v57 = vpop.f32.mrb[4].mxu1  ;;  %v352_v58 = vadd.f32 %v351_v52, %v261_v56  ;;  %v1228_v59 = vpop.f32.mrb[1].mxu0 }
  0xf4   :  { %v1252_v60 = vpop.f32.mrb[5].mxu1  ;;  %v264_v61 = vpop.f32.mrb[2].mxu0 }
  0xf5   :  { %v362_v62 = vpop.f32.mrb[6].mxu1  ;;  %v355_v63 = vadd.f32 %v354_v54, %v264_v61  ;;  %v1229_v1 = vpop.f32.mrb[3].mxu0 }
  0xf6   :  { %v1253_v2 = vpop.f32.mrb[7].mxu1 }
  0xfa   :  { %v269_v3 = vpop.f32.mrb[4].mxu0 }
  0xfb   :  { %v367_v4 = vpop.f32.mrb[8].mxu1  ;;  %v360_v5 = vadd.f32 %v359_v57, %v269_v3  ;;  %v1232_v6 = vpop.f32.mrb[5].mxu0 }
  0xfc   :  { %v1256_v7 = vpop.f32.mrb[9].mxu1  ;;  %v272_v8 = vpop.f32.mrb[6].mxu0 }
  0xfd   :  { %v370_v9 = vpop.f32.mrb[10].mxu1  ;;  %v363_v10 = vadd.f32 %v362_v62, %v272_v8  ;;  %v1233_v11 = vpop.f32.mrb[7].mxu0 }
  0xfe   :  { %v1257_v12 = vpop.f32.mrb[11].mxu1 }
 0x102   :  { %v277_v13 = vpop.f32.mrb[8].mxu0 }
 0x103   :  { %v368_v14 = vadd.f32 %v367_v4, %v277_v13  ;;  %v1236_v15 = vpop.f32.mrb[9].mxu0 }
 0x104   :  { %v280_v16 = vpop.f32.mrb[10].mxu0 }
 0x105   :  { %v1237_v17 = vpop.f32.mrb[11].mxu0 }
 0x10a   :  { %v459_v18 = vpop.f32.mrb[12].mxu0 }
 0x10b   :  { %v481_v20 = vadd.f32 %v459_v18, %v352_v58  ;;  %v1268_v21 = vpop.f32.mrb[13].mxu0 }
 0x10c   :  { %v462_v22 = vpop.f32.mrb[14].mxu0 }
 0x10d   :  { %v493_v23 = vadd.f32 %v1088_v19, %v481_v20  ;;  %v482_v24 = vadd.f32 %v462_v22, %v355_v63  ;;  %v1269_v25 = vpop.f32.mrb[15].mxu0 }
 0x10f   :  { %v498_v27 = vmax.f32 %v493_v23, 0.0  ;;  %v494_v29 = vadd.f32 %v1088_v19, %v482_v24  ;;  %v584_v24 = vld [vmem:[#allocation3 + $0x10] sm:$0x3] }
 0x111   :  { %v1159_v30 = vpack.c.bf16 %v498_v27, %v498_v27  ;;  %v499_v31 = vmax.f32 %v494_v29, 0.0 }
 0x112   :  { %v467_v32 = vpop.f32.mrb[16].mxu0 }
 0x113   :  { %v510_v33 = vshrl.u32 %v1159_v30, 16  ;;  %v1160_v34 = vpack.c.bf16 %v499_v31, %v499_v31  ;;  %v483_v35 = vadd.f32 %v467_v32, %v360_v5  ;;  %v1272_v36 = vpop.f32.mrb[17].mxu0  ;;  %v513_v39 = vshll.u32 %v1159_v30, 16  ;;  %v578_v5 = vld [vmem:[#allocation3 + $0x8] sm:$0xe] }
 0x114   :  { %v470_v37 = vpop.f32.mrb[18].mxu0  ;;  %v1399_v36 = vld [vmem:[%s1752_s3 + $0x80] sm:$0xff]  }
 0x115   :  { %v512_v38 = vrot.slane %v510_v33, 7  ;;  %v518_v40 = vshrl.u32 %v1160_v34, 16  ;;  %v495_v41 = vadd.f32 %v1088_v19, %v483_v35  ;;  %v1273_v42 = vpop.f32.mrb[19].mxu0  ;;  %v484_v44 = vadd.f32 %v470_v37, %v363_v10 }
 0x116   :  { %v521_v47 = vshll.u32 %v1160_v34, 16 }
 0x117   :  { %v515_v45 = vor.u32 %v513_v39, %v512_v38  ;;  %v520_v46 = vrot.slane %v518_v40, 7  ;;  %v500_v48 = vmax.f32 %v495_v41, 0.0  ;;  %v516_v49 = vrot.slane %v512_v38, 4  ;;  %v1401_v38 = vld [vmem:[%s1752_s3 + $0x88] sm:$0xff]  }
 0x118   :  { %v496_v51 = vadd.f32 %v1088_v19, %v484_v44  ;;  %v1403_v44 = vld [vmem:[%s1752_s3 + $0x90] sm:$0xff]  }
 0x119   :  { %v532_v52 = vsel %vm530_vm3, %v515_v45, %v531_v43  ;;  %v523_v53 = vor.u32 %v521_v47, %v520_v46  ;;  %v525_v54 = vrot.slane %v520_v46, 4  ;;  %v1161_v55 = vpack.c.bf16 %v500_v48, %v500_v48  ;;  %v1404_v46 = vld [vmem:[%s1752_s3 + $0x98] sm:$0xff]   ;;  %v1405_v48 = vld [vmem:[%s1752_s3 + $0xa0] sm:$0xff]  }
 0x11a   :  { %533 = vst [vmem:[#allocation3] sm:$0xf] %v532_v52  ;;  %v501_v56 = vmax.f32 %v496_v51, 0.0  ;;  %v475_v57 = vpop.f32.mrb[20].mxu0  ;;  %v1407_v51 = vld [vmem:[%s1752_s3 + $0xb0] sm:$0xff]  }
 0x11b   :  { %v524_v58 = vsel %vm1504_vm13, %v516_v49, %v523_v53  ;;  %v536_v59 = vsel %vm1594_vm15, %v525_v54, %v535_v50  ;;  %v549_v60 = vshrl.u32 %v1161_v55, 16  ;;  %v1276_v61 = vpop.f32.mrb[21].mxu0  ;;  %v485_v63 = vadd.f32 %v475_v57, %v368_v14  ;;  %v1406_v50 = vld [vmem:[%s1752_s3 + $0xa8] sm:$0xff]   ;;  %v1408_v53 = vld [vmem:[%s1752_s3 + $0xb8] sm:$0xff]  }
 0x11c   :  { %534 = vst [vmem:[#allocation3 + $0x4] sm:$0xf] %v524_v58  ;;  %537 = vst [vmem:[#allocation3 + $0x8] sm:$0x1] %v536_v59  ;;  %v1162_v62 = vpack.c.bf16 %v501_v56, %v501_v56  ;;  %v478_v1 = vpop.f32.mrb[22].mxu0  ;;  %v552_v3 = vshll.u32 %v1161_v55, 16 }
 0x11d   :  { %v551_v2 = vrot.slane %v549_v60, 7  ;;  %v1277_v4 = vpop.f32.mrb[23].mxu0  ;;  %v497_v7 = vadd.f32 %v1088_v19, %v485_v63 }
 0x11e   :  { %v557_v6 = vshrl.u32 %v1162_v62, 16  ;;  %v560_v28 = vshll.u32 %v1162_v62, 16 }
 0x11f   :  { %v554_v8 = vor.u32 %v552_v3, %v551_v2  ;;  %v502_v10 = vmax.f32 %v497_v7, 0.0  ;;  %v555_v12 = vrot.slane %v551_v2, 4 }
 0x120   :  { %v559_v9 = vrot.slane %v557_v6, 7 }
 0x121   :  { %v579_v11 = vsel %vm577_vm10, %v554_v8, %v578_v5  ;;  %v1163_v15 = vpack.c.bf16 %v502_v10, %v502_v10  ;;  %v587_v16 = vld [vmem:[#allocation3] sm:$0xf] }
 0x122   :  { %580 = vst [vmem:[#allocation3 + $0x8] sm:$0xe] %v579_v11  ;;  %v562_v13 = vor.u32 %v560_v28, %v559_v9  ;;  %v564_v22 = vrot.slane %v559_v9, 4  ;;  %v879_v52 = vld [vmem:[#allocation3] sm:$0xe] }
 0x123   :  { %v1674_v14 = vld [vmem:[#allocation3 + $0x4] sm:$0xf]  ;;  %v566_v18 = vshrl.u32 %v1163_v15, 16  ;;  %v569_v21 = vshll.u32 %v1163_v15, 16 }
 0x124   :  { %v563_v17 = vsel %vm1504_vm13, %v555_v12, %v562_v13  ;;  %v1110_v20 = vcombine.low %v587_v16, %v1674_v14  ;;  %v1146_v54 = vcombine.low %v879_v52, %v1674_v14 }
 0x125   :  { %581 = vst [vmem:[#allocation3 + $0xc] sm:$0xf] %v563_v17  ;;  %v568_v19 = vrot.slane %v566_v18, 7 }
 0x126   :  { %1323 = vmatmul.mubr.bf16.vlgmr.msra.gmra.mrb[24].mxu0 %v1110_v20  ;;  %v642_v25 = vshll.u32 %v1110_v20, 16  ;;  %v640_v32 = vshrl.u32 %v1110_v20, 16  ;;  %v900_v56 = vrot.slane %v1146_v54, 1 }
 0x127   :  { %1326 = vmatprep.mubr.msk.bf16.mxu0 %vm1411_vm0, %v1410_v0  ;;  %v571_v23 = vor.u32 %v569_v21, %v568_v19 }
 0x128   :  { %v644_v31 = vrot.slane %v642_v25, 1  ;;  %v1155_v25 = vld [vmem:[%s1754_s4] ss:$0 sm:$0xff] }
 0x129   :  { %v572_v27 = vsel %vm1504_vm13, %v564_v22, %v571_v23 }
 0x12a   :  { %v585_v29 = vsel %vm583_vm14, %v572_v27, %v584_v24  ;;  %v645_v34 = vor.u32 %v644_v31, %v640_v32 }
 0x12b   :  { %586 = vst [vmem:[#allocation3 + $0x10] sm:$0x3] %v585_v29 }
 0x12c   :  { %v1397_v30 = vld [vmem:[#allocation3 + $0x8] sm:$0xff]  }
 0x12d   :  { %v647_v33 = vshll.u32 %v1397_v30, 16  ;;  %v651_v40 = vshrl.u32 %v1397_v30, 16  ;;  %v901_v55 = vrot.slane %v1397_v30, 1 }
 0x12e   :  { %1327 = vmatmul.mubr.bf16.gmra.mrb[28].mxu0 %v1397_v30 }
 0x12f   :  { %1330 = vmatprep.mubr.msk.bf16.mxu0 %vm1411_vm0, %v1410_v0  ;;  %v649_v35 = vrot.slane %v647_v33, 1  ;;  %v902_v57 = vsel %vm386_vm11, %v900_v56, %v901_v55 }
 0x131   :  { %v650_v37 = vsel %vm169_vm9, %v645_v34, %v649_v35  ;;  %v653_v42 = vor.u32 %v651_v40, %v649_v35 }
 0x132   :  { %1295 = vmatmul.mubr.bf16.vlgmr.msra.gmra.mrb[12].mxu1 %v650_v37  ;;  %v1400_v26 = vld [vmem:[#allocation3 + $0x10] ss:$0 sps:$4 sm:$0x11]  }
 0x133   :  { %1335 = vmatpush3.bf16.msra.mxu1 %v1399_v36  ;;  %1298 = vmatprep.mubr.msk.bf16.mxu1 %vm1411_vm0, %v1410_v0  ;;  %v1402_v39 = vld [vmem:[#allocation3 + $0x10] ss:$0 sps:$4 sm:$0x33]  }
 0x134   :  { %1336 = vmatprep.subr.bf16.mxu1 %v1410_v0  ;;  %v655_v41 = vshll.u32 %v1402_v39, 16  ;;  %v659_v47 = vshrl.u32 %v1402_v39, 16  ;;  %v903_v58 = vrot.slane %v1402_v39, 1 }
 0x136   :  { %1331 = vmatmul.mubr.bf16.gmra.mrb[32].mxu0 %v1400_v26  ;;  %v657_v43 = vrot.slane %v655_v41, 1  ;;  %v904_v59 = vsel %vm386_vm11, %v901_v55, %v903_v58 }
 0x137   :  { %1337 = vmatpush3.bf16.msra.mxu1 %v1401_v38 }
 0x138   :  { %1338 = vmatprep.subr.bf16.mxu1 %v1410_v0  ;;  %v658_v45 = vsel %vm169_vm9, %v653_v42, %v657_v43  ;;  %v661_v49 = vor.u32 %v659_v47, %v657_v43 }
 0x13a   :  { %1299 = vmatmul.mubr.bf16.gmra.mrb[16].mxu1 %v658_v45 }
 0x13b   :  { %1339 = vmatpush3.bf16.msra.mxu1 %v1403_v44  ;;  %1302 = vmatprep.mubr.msk.bf16.mxu1 %vm1411_vm0, %v1410_v0 }
 0x13c   :  { %1340 = vmatprep.subr.bf16.mxu1 %v1410_v0 }
 0x13f   :  { %1341 = vmatpush3.bf16.msra.mxu1 %v1404_v46 }
 0x140   :  { %1342 = vmatprep.subr.bf16.mxu1 %v1410_v0 }
 0x142   :  { %1303 = vmatmul.mubr.bf16.gmra.mrb[20].mxu1 %v661_v49 }
 0x143   :  { %1343 = vmatpush3.bf16.msra.mxu1 %v1405_v48  ;;  %1350 = vmatprep.mubr.msk.bf16.mxu1 %vm1411_vm0, %v1410_v0 }
 0x144   :  { %1344 = vmatprep.subr.bf16.mxu1 %v1410_v0 }
 0x147   :  { %1345 = vmatpush3.bf16.msra.mxu1 %v1406_v50 }
 0x148   :  { %1346 = vmatprep.subr.bf16.mxu1 %v1410_v0 }
 0x14b   :  { %1347 = vmatpush3.bf16.msra.mxu1 %v1407_v51 }
 0x14c   :  { %1348 = vmatprep.subr.bf16.mxu1 %v1410_v0 }
 0x14f   :  { %1349 = vmatpush3.bf16.msra.mxu1 %v1408_v53 }
 0x152   :  { %1351 = vmatmul.mubr.bf16.vlgmr.msra.gmra.mrb[24].mxu1 %v902_v57 }
 0x153   :  { %1354 = vmatprep.mubr.msk.bf16.mxu1 %vm1411_vm0, %v1410_v0 }
 0x15a   :  { %1355 = vmatmul.mubr.bf16.gmra.mrb[28].mxu1 %v904_v59 }
 0x15b   :  { %1358 = vmatprep.mubr.msk.bf16.mxu1 %vm1411_vm0, %v1410_v0 }
 0x162   :  { %1359 = vmatmul.mubr.bf16.gmra.mrb[32].mxu1 %v903_v58 }
 0x1f9   :  { %v857_v60 = vpop.f32.mrb[24].mxu0 }
 0x1fa   :  { %v1324_v61 = vpop.f32.mrb[25].mxu0 }
 0x1fb   :  { %v860_v62 = vpop.f32.mrb[26].mxu0 }
 0x1fc   :  { %v1325_v63 = vpop.f32.mrb[27].mxu0 }
 0x201   :  { %v865_v1 = vpop.f32.mrb[28].mxu0 }
 0x202   :  { %v1328_v2 = vpop.f32.mrb[29].mxu0 }
 0x203   :  { %v868_v3 = vpop.f32.mrb[30].mxu0 }
 0x204   :  { %v1329_v4 = vpop.f32.mrb[31].mxu0 }
 0x205   :  { %v747_v5 = vpop.f32.mrb[12].mxu1 }
 0x206   :  { %v858_v6 = vadd.f32 %v857_v60, %v747_v5  ;;  %v1296_v7 = vpop.f32.mrb[13].mxu1 }
 0x207   :  { %v750_v8 = vpop.f32.mrb[14].mxu1 }
 0x208   :  { %v861_v9 = vadd.f32 %v860_v62, %v750_v8  ;;  %v1297_v28 = vpop.f32.mrb[15].mxu1 }
 0x209   :  { %v873_v10 = vpop.f32.mrb[32].mxu0 }
 0x20a   :  { %v1332_v11 = vpop.f32.mrb[33].mxu0 }
 0x20b   :  { %v876_v12 = vpop.f32.mrb[34].mxu0 }
 0x20c   :  { %v1333_v13 = vpop.f32.mrb[35].mxu0 }
 0x20d   :  { %v755_v0 = vpop.f32.mrb[16].mxu1 }
 0x20e   :  { %v866_v15 = vadd.f32 %v865_v1, %v755_v0  ;;  %v1300_v16 = vpop.f32.mrb[17].mxu1 }
 0x20f   :  { %v758_v14 = vpop.f32.mrb[18].mxu1 }
 0x210   :  { %v869_v17 = vadd.f32 %v868_v3, %v758_v14  ;;  %v1301_v18 = vpop.f32.mrb[19].mxu1 }
 0x215   :  { %v763_v20 = vpop.f32.mrb[20].mxu1 }
 0x216   :  { %v874_v19 = vadd.f32 %v873_v10, %v763_v20  ;;  %v1304_v21 = vpop.f32.mrb[21].mxu1 }
 0x217   :  { %v766_v22 = vpop.f32.mrb[22].mxu1 }
 0x218   :  { %v1305_v23 = vpop.f32.mrb[23].mxu1 }
 0x225   :  { %v990_v24 = vpop.f32.mrb[24].mxu1 }
 0x226   :  { %v1012_v27 = vadd.f32 %v990_v24, %v858_v6  ;;  %v1352_v29 = vpop.f32.mrb[25].mxu1 }
 0x227   :  { %v993_v30 = vpop.f32.mrb[26].mxu1 }
 0x228   :  { %v1024_v31 = vadd.f32 %v1155_v25, %v1012_v27  ;;  %v1013_v32 = vadd.f32 %v993_v30, %v861_v9  ;;  %v1353_v33 = vpop.f32.mrb[27].mxu1 }
 0x22a   :  { %v1029_v34 = vmax.f32 %v1024_v31, 0.0  ;;  %v1025_v35 = vadd.f32 %v1155_v25, %v1013_v32 }
 0x22c   :  { %1034 = vst [vmem:[%s1755_s5] sm:$0xff] %v1029_v34  ;;  %v1030_v36 = vmax.f32 %v1025_v35, 0.0 }
 0x22d   :  { %v998_v37 = vpop.f32.mrb[28].mxu1 }
 0x22e   :  { %1035 = vst [vmem:[%s1755_s5 + $0x8] sm:$0xff] %v1030_v36  ;;  %v1014_v26 = vadd.f32 %v998_v37, %v866_v15  ;;  %v1356_v38 = vpop.f32.mrb[29].mxu1 }
 0x22f   :  { %v1001_v39 = vpop.f32.mrb[30].mxu1 }
 0x230   :  { %v1026_v40 = vadd.f32 %v1155_v25, %v1014_v26  ;;  %v1015_v41 = vadd.f32 %v1001_v39, %v869_v17  ;;  %v1357_v42 = vpop.f32.mrb[31].mxu1 }
 0x232   :  { %v1031_v43 = vmax.f32 %v1026_v40, 0.0  ;;  %v1027_v44 = vadd.f32 %v1155_v25, %v1015_v41 }
 0x234   :  { %1156 = vst [vmem:[%s1755_s5 + $0xe] sm:$0xfc] %v1031_v43  ;;  %v1032_v45 = vmax.f32 %v1027_v44, 0.0 }
 0x235   :  { %v1006_v46 = vpop.f32.mrb[32].mxu1 }
 0x236   :  { %1157 = vst [vmem:[%s1755_s5 + $0x16] sm:$0xff] %v1032_v45  ;;  %v1016_v47 = vadd.f32 %v1006_v46, %v874_v19  ;;  %v1360_v48 = vpop.f32.mrb[33].mxu1 }
 0x237   :  { %v1009_v49 = vpop.f32.mrb[34].mxu1 }
 0x238   :  { %v1028_v50 = vadd.f32 %v1155_v25, %v1016_v47  ;;  %v1361_v51 = vpop.f32.mrb[35].mxu1 }
 0x23a   :  { %v1033_v52 = vmax.f32 %v1028_v50, 0.0 }
 0x23c   :  { %1158 = vst [vmem:[%s1755_s5 + $0x1e] sm:$0x3] %v1033_v52 }

</bundles_post_ra>
